<compile_context>
chip_gen: v6e
topology: v6e:2x2x1
jax: 0.10.0
libtpu: 0.0.40
codegen_flags: <defaults>
</compile_context>

<pallas_src>
import functools

import jax
import jax.numpy as jnp
from jax import lax
from jax.experimental import pallas as pl
from jax.experimental.pallas import tpu as pltpu


def _round_up(n, m):
    return ((n + m - 1) // m) * m


def _mix32(h):
    # "lowbias32" integer hash — pure 32-bit VPU ops. Fallback PRNG only
    # (non-TPU backends / interpret mode).
    h = h ^ (h >> 16)
    h = h * jnp.uint32(0x7FEB352D)
    h = h ^ (h >> 15)
    h = h * jnp.uint32(0x846CA68B)
    h = h ^ (h >> 16)
    return h


def _model_kernel(task_ref, seed_ref, x_ref, w_ref, b_ref, a_ref, o_ref, acc_ref, *,
                  q, tb, d_pad, use_hw_prng):
    """grid = (batch tile i ["parallel"], M tile j ["arbitrary" reduction])."""
    del task_ref                                   # consumed by A's index_map
    j = pl.program_id(1)

    @pl.when(j == 0)
    def _():
        acc_ref[...] = jnp.zeros_like(acc_ref)

    x = x_ref[...].astype(jnp.float32)             # (tb, d_pad)

    # ---- dropout (training mode) -------------------------------------------
    # Mask depends only on (seed, batch tile, element position) -> identical for
    # every M-tile j, so recomputing it per j is correct.
    if q > 0.0:
        if use_hw_prng:
            # hardware PRNG: one cheap op per vreg instead of ~10 VALU ops/elem
            pltpu.prng_seed(seed_ref[0], pl.program_id(0))
            bits = pltpu.bitcast(pltpu.prng_random_bits(x.shape), jnp.uint32)
        else:
            # counter-based hash fallback (runs on any backend / interpret mode)
            row_off = pl.program_id(0) * tb
            rows = lax.broadcasted_iota(jnp.int32, x.shape, 0) + row_off
            cols = lax.broadcasted_iota(jnp.int32, x.shape, 1)
            key = rows.astype(jnp.uint32) * jnp.uint32(d_pad) + cols.astype(jnp.uint32)
            seed_u = seed_ref[0].astype(jnp.uint32) * jnp.uint32(0x9E3779B9)
            bits = _mix32(key ^ seed_u)
        r = bits >> 9                               # uniform in [0, 2^23)
        thresh = jnp.uint32(int(round(q * float(1 << 23))))
        keep = r >= thresh                          # P(keep) = 1 - q
        x = jnp.where(keep, x * jnp.float32(1.0 / (1.0 - q)), jnp.float32(0.0))

    # ---- fc chunk: x @ W_j^T + b_j  (MXU, bf16 operands, f32 accumulation) ---
    # dot_general contracts d on both operands -> W stays (tm, d), no transpose.
    h1 = lax.dot_general(
        x.astype(jnp.bfloat16), w_ref[...],
        dimension_numbers=(((1,), (1,)), ((), ())),
        preferred_element_type=jnp.float32,
    ) + b_ref[...]                                  # (tb, tm)

    # ---- task projection chunk: accumulate h1_j @ A[task]_j ------------------
    acc_ref[...] += jnp.dot(h1.astype(jnp.bfloat16), a_ref[...],
                            preferred_element_type=jnp.float32)

    @pl.when(j == pl.num_programs(1) - 1)
    def _():
        o_ref[...] = acc_ref[...].astype(o_ref.dtype)


def prepare_params(w, b, A):
    """Pad to lane-dense shapes + bf16-cast ONCE (at init time, not per call)."""
    M, d = w.shape
    T, M2, P = A.shape
    assert M2 == M and b.shape == (M,)
    d_pad, M_pad, P_pad = _round_up(d, 128), _round_up(M, 128), _round_up(P, 128)
    return dict(
        w=jnp.pad(w, ((0, M_pad - M), (0, d_pad - d))).astype(jnp.bfloat16),
        b=jnp.pad(b, ((0, M_pad - M),)).reshape(1, M_pad).astype(jnp.float32),
        A=jnp.pad(A, ((0, 0), (0, M_pad - M), (0, P_pad - P))).astype(jnp.bfloat16),
        d=int(d), M=int(M), P=int(P), T=int(T),
    )


def model_forward(params, x, task, seed, q, *, tb=None, tb_cap=256):
    """out = Linear(d, M)(Dropout(q)(x)) @ A[task]   (training-mode dropout)."""
    assert 0.0 <= q < 1.0, "dropout prob must be in [0, 1)"
    w_p, b_p, A_p = params["w"], params["b"], params["A"]
    d, P = params["d"], params["P"]
    M_pad, d_pad = w_p.shape
    P_pad = A_p.shape[-1]
    B = x.shape[0]
    assert x.shape[1] == d

    # ---- batch tiling: >=2 grid steps when possible (both v7x TCs), cap padding
    B8 = _round_up(B, 8)
    if tb is None:
        tb0 = max(8, min(tb_cap, _round_up((B8 + 1) // 2, 8)))
    else:
        tb0 = max(8, _round_up(min(tb, B8), 8))
    nb = -(-B8 // tb0)                       # cdiv
    tb = _round_up(-(-B8 // nb), 8)          # shrink tile -> padding < one sublane tile
    B_pad = nb * tb

    # ---- M tiling: keep resident bf16 weight chunks within a safe VMEM budget
    # (v7x has only 64 MiB VMEM per TensorCore).
    weight_budget = 24 * 1024 * 1024
    per_m_bytes = (d_pad + P_pad) * 2
    if M_pad * per_m_bytes <= weight_budget:
        tm, nm = M_pad, 1
    else:
        target = max(128, (weight_budget // (2 * per_m_bytes)) // 128 * 128)
        tm = 128
        for cand in range(128, M_pad + 1, 128):
            if M_pad % cand == 0 and cand <= target:
                tm = cand
        nm = M_pad // tm
    # TODO(synk): extremely large d (x tile / W chunk alone > ~16 MiB) would also
    # need a d-contraction grid axis; not implemented here.

    # Grid-invariant weights (M untiled) need only a single VMEM buffer; streamed
    # M-chunks keep default double-buffering.
    wmode = pl.Buffered(1) if nm == 1 else None

    # ---- pad x only if needed (params were pre-padded once) -------------------
    if (B_pad, d_pad) != x.shape:
        x_p = jnp.pad(x, ((0, B_pad - B), (0, d_pad - d)))
    else:
        x_p = x

    task_arr = jnp.asarray([task], dtype=jnp.int32)
    seed_arr = jnp.asarray([seed], dtype=jnp.int32)

    use_hw_prng = jax.default_backend() == "tpu"
    kernel = functools.partial(_model_kernel, q=float(q), tb=tb, d_pad=d_pad,
                               use_hw_prng=use_hw_prng)

    # ---- VMEM limit from actual buffer math (+headroom), capped for v7x -------
    xbytes = x_p.dtype.itemsize
    obytes = x.dtype.itemsize
    wbufs = 1 if nm == 1 else 2
    vmem_need = (2 * tb * d_pad * xbytes          # x tiles (double-buffered)
                 + 2 * tb * P_pad * obytes        # out tiles (double-buffered)
                 + wbufs * tm * d_pad * 2         # W chunk(s), bf16
                 + wbufs * 8 * tm * 4             # bias chunk(s), sublane-padded
                 + wbufs * tm * P_pad * 2         # A[task] chunk(s), bf16
                 + tb * P_pad * 4                 # f32 accumulator scratch
                 + tb * tm * 4                    # h1 intermediate
                 + 4 * tb * d_pad * 4)            # dropout temporaries headroom
    vmem_limit = int(min(max(2 * vmem_need, 32 * 1024 * 1024), 64 * 1024 * 1024))

    cost = pl.CostEstimate(
        flops=2 * B_pad * d_pad * M_pad + 2 * B_pad * M_pad * P_pad,
        transcendentals=0,
        bytes_accessed=(B_pad * d_pad * xbytes + M_pad * d_pad * 2 + M_pad * 4
                        + M_pad * P_pad * 2 + B_pad * P_pad * obytes),
    )

    out_p = pl.pallas_call(
        kernel,
        out_shape=jax.ShapeDtypeStruct((B_pad, P_pad), x.dtype),
        grid_spec=pltpu.PrefetchScalarGridSpec(
            num_scalar_prefetch=2,                   # task, seed -> SMEM
            grid=(nb, nm),                           # batch tiles x M tiles
            in_specs=[
                pl.BlockSpec((tb, d_pad), lambda i, j, task, seed: (i, 0)),   # x tile
                pl.BlockSpec((tm, d_pad), lambda i, j, task, seed: (j, 0),    # W chunk
                             pipeline_mode=wmode),
                pl.BlockSpec((1, tm), lambda i, j, task, seed: (0, j),        # bias chunk
                             pipeline_mode=wmode),
                # leading task dim squeezed; only A[task] is ever DMA'd
                pl.BlockSpec((None, tm, P_pad),
                             lambda i, j, task, seed: (task[0], j, 0),
                             pipeline_mode=wmode),
            ],
            out_specs=pl.BlockSpec((tb, P_pad), lambda i, j, task, seed: (i, 0)),
            scratch_shapes=[pltpu.VMEM((tb, P_pad), jnp.float32)],
        ),
        compiler_params=pltpu.CompilerParams(
            dimension_semantics=("parallel", "arbitrary"),
            vmem_limit_bytes=vmem_limit),
        cost_estimate=cost,
    )(task_arr, seed_arr, x_p, w_p, b_p, A_p)

    return out_p[:B, :P]


if __name__ == "__main__":
    # Small shapes consistent with the module: d features, M hidden, T tasks, P out.
    B, d, M, P, T = 8, 32, 32, 32, 4
    q = 0.1
    task = 2
    seed = 1234

    key = jax.random.PRNGKey(0)
    kx, kw, kb, ka = jax.random.split(key, 4)

    x = jax.random.normal(kx, (B, d), dtype=jnp.float32)
    # PyTorch nn.Linear default init: U(-1/sqrt(d), 1/sqrt(d))
    bound = 1.0 / (d ** 0.5)
    w = jax.random.uniform(kw, (M, d), minval=-bound, maxval=bound, dtype=jnp.float32)
    b = jax.random.uniform(kb, (M,), minval=-bound, maxval=bound, dtype=jnp.float32)
    A = jax.random.normal(ka, (T, M, P), dtype=jnp.float32)

    params = prepare_params(w, b, A)          # one-time pad + bf16 cast

    out = model_forward(params, x, task, seed, q)
    jax.block_until_ready(out)
    assert out.shape == (B, P), out.shape
    assert bool(jnp.all(jnp.isfinite(out)))

    # Sanity check against pure-JAX f32 reference with dropout disabled.
    # MXU operands are bf16 (f32 accumulation), so tolerance is bf16-appropriate.
    out_nodrop = model_forward(params, x, task, seed, 0.0)
    ref = (x @ w.T + b) @ A[task]
    assert jnp.allclose(out_nodrop, ref, atol=1e-1, rtol=5e-2), (
        float(jnp.max(jnp.abs(out_nodrop - ref))))

    print("KERNEL_OK")
</pallas_src>

<mosaic_0001>
module attributes {stable_mosaic.version = 11 : i64} {
  func.func @_model_kernel(%arg0: i32, %arg1: i32, %arg2: memref<1xi32, #tpu.memory_space<smem>>, %arg3: memref<1xi32, #tpu.memory_space<smem>>, %arg4: memref<8x128xf32, #tpu.memory_space<vmem>>, %arg5: memref<128x128xbf16, #tpu.memory_space<vmem>>, %arg6: memref<1x128xf32, #tpu.memory_space<vmem>>, %arg7: memref<1x128x128xbf16, #tpu.memory_space<vmem>>, %arg8: memref<8x128xf32, #tpu.memory_space<vmem>>, %arg9: memref<8x128xf32, #tpu.memory_space<vmem>>) attributes {dimension_semantics = [#tpu.dimension_semantics<parallel>, #tpu.dimension_semantics<arbitrary>], iteration_bounds = array<i64: 1, 1>, scalar_prefetch = 2 : i64, scratch_operands = 1 : i64, tpu.core_type = #tpu.core_type<tc>, window_params = [{transform_indices = @transform_0, window_bounds = array<i64: 8, 128>}, {pipeline_mode = #tpu.pipeline_mode<synchronous>, transform_indices = @transform_1, window_bounds = array<i64: 128, 128>}, {pipeline_mode = #tpu.pipeline_mode<synchronous>, transform_indices = @transform_2, window_bounds = array<i64: 1, 128>}, {pipeline_mode = #tpu.pipeline_mode<synchronous>, transform_indices = @transform_3, window_bounds = array<i64: 1, 128, 128>}, {transform_indices = @transform_4, window_bounds = array<i64: 8, 128>}]} {
    %c0_i32 = arith.constant 0 : i32
    %0 = arith.cmpi eq, %arg1, %c0_i32 : i32
    %1 = arith.extui %0 : i1 to i32
    %c0_i32_0 = arith.constant 0 : i32
    %2 = arith.cmpi ne, %1, %c0_i32_0 : i32
    scf.if %2 {
      %cst_20 = arith.constant 0.000000e+00 : f32
      %53 = vector.broadcast %cst_20 : f32 to vector<8x128xf32>
      %c0_21 = arith.constant 0 : index
      %c0_22 = arith.constant 0 : index
      %54 = vector.load %arg9[%c0_21, %c0_22] : memref<8x128xf32, #tpu.memory_space<vmem>>, vector<8x128xf32>
      tpu.vector_store %arg9[%c0_21, %c0_22], %53 {strides = array<i32>} : memref<8x128xf32, #tpu.memory_space<vmem>>, vector<8x128xf32>,
    } else {
    }
    %c0 = arith.constant 0 : index
    %c0_1 = arith.constant 0 : index
    %3 = vector.load %arg4[%c0, %c0_1] : memref<8x128xf32, #tpu.memory_space<vmem>>, vector<8x128xf32>
    %c8_i32 = arith.constant 8 : i32
    %4 = arith.muli %arg0, %c8_i32 : i32
    %5 = tpu.iota {dimensions = array<i32: 0>} : vector<8x128xi32>
    %6 = vector.broadcast %4 : i32 to vector<8x128xi32>
    %7 = arith.addi %5, %6 : vector<8x128xi32>
    %8 = tpu.iota {dimensions = array<i32: 1>} : vector<8x128xi32>
    %c128_i32 = arith.constant 128 : i32
    %9 = vector.broadcast %c128_i32 : i32 to vector<8x128xi32>
    %10 = arith.muli %7, %9 : vector<8x128xi32>
    %11 = arith.addi %10, %8 : vector<8x128xi32>
    %c0_2 = arith.constant 0 : index
    %12 = memref.load %arg3[%c0_2] : memref<1xi32, #tpu.memory_space<smem>>
    %c-1640531527_i32 = arith.constant -1640531527 : i32
    %13 = arith.muli %12, %c-1640531527_i32 : i32
    %14 = vector.broadcast %13 : i32 to vector<8x128xi32>
    %15 = arith.xori %11, %14 : vector<8x128xi32>
    %c16_i32 = arith.constant 16 : i32
    %16 = vector.broadcast %c16_i32 : i32 to vector<8x128xi32>
    %17 = arith.shrui %15, %16 : vector<8x128xi32>
    %18 = arith.xori %15, %17 : vector<8x128xi32>
    %c2146121005_i32 = arith.constant 2146121005 : i32
    %19 = vector.broadcast %c2146121005_i32 : i32 to vector<8x128xi32>
    %20 = arith.muli %18, %19 : vector<8x128xi32>
    %c15_i32 = arith.constant 15 : i32
    %21 = vector.broadcast %c15_i32 : i32 to vector<8x128xi32>
    %22 = arith.shrui %20, %21 : vector<8x128xi32>
    %23 = arith.xori %20, %22 : vector<8x128xi32>
    %c-2073254261_i32 = arith.constant -2073254261 : i32
    %24 = vector.broadcast %c-2073254261_i32 : i32 to vector<8x128xi32>
    %25 = arith.muli %23, %24 : vector<8x128xi32>
    %c16_i32_3 = arith.constant 16 : i32
    %26 = vector.broadcast %c16_i32_3 : i32 to vector<8x128xi32>
    %27 = arith.shrui %25, %26 : vector<8x128xi32>
    %28 = arith.xori %25, %27 : vector<8x128xi32>
    %c9_i32 = arith.constant 9 : i32
    %29 = vector.broadcast %c9_i32 : i32 to vector<8x128xi32>
    %30 = arith.shrui %28, %29 : vector<8x128xi32>
    %c838861_i32 = arith.constant 838861 : i32
    %31 = vector.broadcast %c838861_i32 : i32 to vector<8x128xi32>
    %32 = arith.cmpi uge, %30, %31 : vector<8x128xi32>
    %cst = arith.constant 1.11111116 : f32
    %33 = vector.broadcast %cst : f32 to vector<8x128xf32>
    %34 = arith.mulf %3, %33 : vector<8x128xf32>
    %cst_4 = arith.constant 0.000000e+00 : f32
    %35 = vector.broadcast %cst_4 : f32 to vector<8x128xf32>
    %36 = arith.select %32, %34, %35 : vector<8x128xi1>, vector<8x128xf32>
    %37 = arith.truncf %36 : vector<8x128xf32> to vector<8x128xbf16>
    %c0_5 = arith.constant 0 : index
    %c0_6 = arith.constant 0 : index
    %38 = vector.load %arg5[%c0_5, %c0_6] : memref<128x128xbf16, #tpu.memory_space<vmem>>, vector<128x128xbf16>
    %cst_7 = arith.constant dense<0.000000e+00> : vector<8x128xf32>
    %39 = tpu.matmul %37, %38, %cst_7 {dimension_numbers = #tpu.dot_dimension_numbers<[1], [1], [0], [0], [0, 0, 1, 0], [], []>} : vector<8x128xbf16>, vector<128x128xbf16>, vector<8x128xf32> -> vector<8x128xf32>
    %c0_8 = arith.constant 0 : index
    %c0_9 = arith.constant 0 : index
    %40 = vector.load %arg6[%c0_8, %c0_9] : memref<1x128xf32, #tpu.memory_space<vmem>>, vector<1x128xf32>
    %41 = vector.broadcast %40 : vector<1x128xf32> to vector<8x128xf32>
    %42 = arith.addf %39, %41 : vector<8x128xf32>
    %c0_10 = arith.constant 0 : index
    %c0_11 = arith.constant 0 : index
    %43 = vector.load %arg9[%c0_10, %c0_11] : memref<8x128xf32, #tpu.memory_space<vmem>>, vector<8x128xf32>
    %44 = arith.truncf %42 : vector<8x128xf32> to vector<8x128xbf16>
    %c0_12 = arith.constant 0 : index
    %c0_13 = arith.constant 0 : index
    %c0_14 = arith.constant 0 : index
    %45 = vector.load %arg7[%c0_12, %c0_13, %c0_14] : memref<1x128x128xbf16, #tpu.memory_space<vmem>>, vector<1x128x128xbf16>
    %46 = vector.shape_cast %45 : vector<1x128x128xbf16> to vector<128x128xbf16>
    %cst_15 = arith.constant dense<0.000000e+00> : vector<8x128xf32>
    %47 = tpu.matmul %44, %46, %cst_15 {dimension_numbers = #tpu.dot_dimension_numbers<[1], [0], [0], [1], [0, 0, 1, 1], [], []>} : vector<8x128xbf16>, vector<128x128xbf16>, vector<8x128xf32> -> vector<8x128xf32>
    %48 = arith.addf %43, %47 : vector<8x128xf32>
    %c0_16 = arith.constant 0 : index
    %c0_17 = arith.constant 0 : index
    %49 = vector.load %arg9[%c0_16, %c0_17] : memref<8x128xf32, #tpu.memory_space<vmem>>, vector<8x128xf32>
    tpu.vector_store %arg9[%c0_16, %c0_17], %48 {strides = array<i32>} : memref<8x128xf32, #tpu.memory_space<vmem>>, vector<8x128xf32>,
    %c0_i32_18 = arith.constant 0 : i32
    %50 = arith.cmpi eq, %arg1, %c0_i32_18 : i32
    %51 = arith.extui %50 : i1 to i32
    %c0_i32_19 = arith.constant 0 : i32
    %52 = arith.cmpi ne, %51, %c0_i32_19 : i32
    scf.if %52 {
      %c0_20 = arith.constant 0 : index
      %c0_21 = arith.constant 0 : index
      %53 = vector.load %arg9[%c0_20, %c0_21] : memref<8x128xf32, #tpu.memory_space<vmem>>, vector<8x128xf32>
      %c0_22 = arith.constant 0 : index
      %c0_23 = arith.constant 0 : index
      %54 = vector.load %arg8[%c0_22, %c0_23] : memref<8x128xf32, #tpu.memory_space<vmem>>, vector<8x128xf32>
      tpu.vector_store %arg8[%c0_22, %c0_23], %53 {strides = array<i32>} : memref<8x128xf32, #tpu.memory_space<vmem>>, vector<8x128xf32>,
    } else {
    }
    return
  }
  func.func @transform_0(%arg0: i32, %arg1: i32, %arg2: memref<1xi32, #tpu.memory_space<smem>>, %arg3: memref<1xi32, #tpu.memory_space<smem>>) -> (i32, i32) {
    %c0_i32 = arith.constant 0 : i32
    %c0_i32_0 = arith.constant 0 : i32
    return %arg0, %c0_i32 : i32, i32
  }
  func.func @transform_1(%arg0: i32, %arg1: i32, %arg2: memref<1xi32, #tpu.memory_space<smem>>, %arg3: memref<1xi32, #tpu.memory_space<smem>>) -> (i32, i32) {
    %c0_i32 = arith.constant 0 : i32
    %c0_i32_0 = arith.constant 0 : i32
    return %arg1, %c0_i32 : i32, i32
  }
  func.func @transform_2(%arg0: i32, %arg1: i32, %arg2: memref<1xi32, #tpu.memory_space<smem>>, %arg3: memref<1xi32, #tpu.memory_space<smem>>) -> (i32, i32) {
    %c0_i32 = arith.constant 0 : i32
    %c0_i32_0 = arith.constant 0 : i32
    return %c0_i32, %arg1 : i32, i32
  }
  func.func @transform_3(%arg0: i32, %arg1: i32, %arg2: memref<1xi32, #tpu.memory_space<smem>>, %arg3: memref<1xi32, #tpu.memory_space<smem>>) -> (i32, i32, i32) {
    %c0 = arith.constant 0 : index
    %0 = memref.load %arg2[%c0] : memref<1xi32, #tpu.memory_space<smem>>
    %c0_i32 = arith.constant 0 : i32
    %c0_i32_0 = arith.constant 0 : i32
    return %0, %arg1, %c0_i32 : i32, i32, i32
  }
  func.func @transform_4(%arg0: i32, %arg1: i32, %arg2: memref<1xi32, #tpu.memory_space<smem>>, %arg3: memref<1xi32, #tpu.memory_space<smem>>) -> (i32, i32) {
    %c0_i32 = arith.constant 0 : i32
    %c0_i32_0 = arith.constant 0 : i32
    return %arg0, %c0_i32 : i32, i32
  }
}

</mosaic_0001>

<bundles_post_ra>
// kernel: tpu_custom_call.1
= control target key start
LH: loop header
LB: loop body
LE: loop exit
PB: predicated region body
PF: predicated region fallthrough
CT: control target
= control target key end

     0   :  { %13 = vsyncpa [#allocation7], 0  ;;  %s610_s0 = inlined_call_operand.<no memory space> [shape: s32[1], index: 0, kind: input, shape index: {}]   ;;  %s611_s1 = inlined_call_operand.<no memory space> [shape: s32[1], index: 1, kind: input, shape index: {}]   ;;  %s612_s2 = inlined_call_operand.hbm [shape: f32[8,128], index: 2, kind: input, shape index: {}]   ;;  %s613_s3 = inlined_call_operand.hbm [shape: bf16[128,128], index: 3, kind: input, shape index: {}]   ;;  %s614_s4 = inlined_call_operand.vmem [shape: f32[1,128], index: 4, kind: input, shape index: {}]   ;;  %s615_s5 = inlined_call_operand.hbm [shape: bf16[4,128,128], index: 5, kind: input, shape index: {}]   ;;  %s616_s6 = inlined_call_operand.hbm [shape: f32[8,128], index: 6, kind: output, shape index: {}]  }
   0x1   :  { %14 = vsyncpa [#allocation10], 0 }
   0x2   :  { %15 = vsyncpa [#allocation8], 0  ;;  %s534_s21 = smov [#allocation9]  }
   0x3   :  { %s31_s22 = sshll.u32 %s534_s21, 4  ;;  %s32_s22 = int_to_ptr.vmem [resolvable:$true] %s31_s22 }
   0x4   :  { %s454_s23 = scalar_lea.vmem %s32_s22, 1024  ;;  %p459_p1 = scmp.lt.s32.totalorder %s32_s22, %s32_s22 }
   0x5   :  { %p455_p0 = scmp.ne.s32.totalorder %s32_s22, %s454_s23  ;;  %p460_p2 = scmp.lt.s32.totalorder %s454_s23, %s454_s23 }
   0x7   :  { %p461_p3 = por %p460_p2, %p459_p1 }
   0x9   :  { %p462_p4 = pnand %p461_p3, %p455_p0 }
   0xb   :  { %465 = shalt.err (!%p462_p4)
}
   0xc   :  { %s535_s24 = smov 64   ;;  %s536_s25 = smov 4  }
   0xd   :  { %37 = dma.hbm_to_vmem [thread:$0]  %s613_s3, 1024, %s32_s22, [#allocation10], %s535_s24, %s535_s24, %s536_s25  }
   0xe   :  { %s537_s28 = smov [#allocation6]   ;;  %s363_s8 = sshll.u32 %s610_s0, 10 }
   0xf   :  { %s22_s29 = sshll.u32 %s537_s28, 4  ;;  %s23_s29 = int_to_ptr.vmem [resolvable:$true] %s22_s29 }
  0x10   :  { %s474_s9 = scalar_lea.vmem %s23_s29, 128  ;;  %p479_p6 = scmp.lt.s32.totalorder %s23_s29, %s23_s29 }
  0x11   :  { %p475_p5 = scmp.ne.s32.totalorder %s23_s29, %s474_s9  ;;  %p480_p7 = scmp.lt.s32.totalorder %s474_s9, %s474_s9 }
  0x13   :  { %p481_p8 = por %p480_p7, %p479_p6 }
  0x15   :  { %p482_p9 = pnand %p481_p8, %p475_p5 }
  0x17   :  { %485 = shalt.err (!%p482_p9)
}
  0x18   :  { %25 = dma.hbm_to_vmem [thread:$0]  %s612_s2, 128, %s23_s29, [#allocation7]  }
  0x19   :  { %s48_s13 = scalar_lea.hbm %s615_s5, %s363_s8  ;;  %s538_s14 = smov [#allocation11]  }
  0x1a   :  { %s49_s15 = sshll.u32 %s538_s14, 4  ;;  %s486_s0 = scalar_lea.hbm %s48_s13, 1024  ;;  %s50_s15 = int_to_ptr.vmem [resolvable:$true] %s49_s15 }
  0x1b   :  { %p487_p10 = scmp.ne.s32.totalorder %s48_s13, %s486_s0  ;;  %s488_s18 = scalar_lea.hbm %s615_s5, 4096 }
  0x1c   :  { %p489_p11 = scmp.lt.s32.totalorder %s48_s13, %s615_s5  ;;  %p490_p12 = scmp.lt.s32.totalorder %s488_s18, %s486_s0 }
  0x1e   :  { %p491_p13 = por %p490_p12, %p489_p11 }
  0x20   :  { %p492_p0 = pnand %p491_p13, %p487_p10 }
  0x22   :  { %495 = shalt.err (!%p492_p0)
}
  0x23   :  { %s496_s2 = scalar_lea.vmem %s50_s15, 1024  ;;  %p501_p2 = scmp.lt.s32.totalorder %s50_s15, %s50_s15 }
  0x24   :  { %p497_p1 = scmp.ne.s32.totalorder %s50_s15, %s496_s2  ;;  %p502_p3 = scmp.lt.s32.totalorder %s496_s2, %s496_s2 }
  0x26   :  { %p503_p4 = por %p502_p3, %p501_p2 }
  0x28   :  { %p504_p5 = pnand %p503_p4, %p497_p1 }
  0x2a   :  { %507 = shalt.err (!%p504_p5)
}
  0x2b   :  { %55 = dma.hbm_to_vmem [thread:$0]  %s48_s13, 1024, %s50_s15, [#allocation10], %s535_s24, %s535_s24, %s536_s25  }
  0x2c   :  { %528 = dma.done.wait [#allocation7], 128  }
  0x2d   :  { %529 = vsyncadd [#allocation7], 4294967168 }
  0x2e   :  { %530 = dma.done.wait [#allocation10], 2048  }
  0x2f   :  { %531 = vsyncadd [#allocation10], 4294965248  ;;  %v539_v0 = vmov 0.0   ;;  %vm540_vm0 = vmmov 0   ;;  %v430_v1 = vld [vmem:[#allocation9 + $0x38] sm:$0xff]   ;;  %v74_v2 = vlaneseq  ;;  %v431_v3 = vld [vmem:[#allocation9 + $0x30] sm:$0xff]  }
  0x30   :  { %382 = vmatprep.subr.bf16.mxu0 %v539_v0  ;;  %398 = vmatprep.mubr.msk.bf16.mxu0 %vm540_vm0, %v539_v0  ;;  %v438_v5 = vld [vmem:[#allocation11 + $0x38] sm:$0xff]   ;;  %v439_v6 = vld [vmem:[#allocation11 + $0x30] sm:$0xff]   ;;  %s83_s22 = smul.u32 2654435769, %s611_s1  ;;  %v432_v9 = vld [vmem:[#allocation9 + $0x28] sm:$0xff]   ;;  %s541_s24 = smov [#allocation12]  }
  0x31   :  { %402 = vmatprep.subr.bf16.mxu1 %v539_v0  ;;  %418 = vmatprep.mubr.msk.bf16.mxu1 %vm540_vm0, %v539_v0  ;;  %v75_v4 = vshrl.u32 %v74_v2, 7  ;;  %v79_v7 = vand.u32 127, %v74_v2  ;;  %v440_v10 = vld [vmem:[#allocation11 + $0x28] sm:$0xff]   ;;  %v441_v13 = vld [vmem:[#allocation11 + $0x20] sm:$0xff]   ;;  %v442_v16 = vld [vmem:[#allocation11 + $0x18] sm:$0xff]   ;;  %s329_s25 = sshll.u32 %s541_s24, 4  ;;  %s330_s25 = int_to_ptr.vmem [resolvable:$true] %s329_s25 }
  0x32   :  { %383 = vmatpush3.bf16.xpose.msra.mxu0 %v430_v1  ;;  %403 = vmatpush3.bf16.msra.mxu1 %v438_v5  ;;  %v84_v12 = vstv %s83_s22  ;;  %v433_v15 = vld [vmem:[#allocation9 + $0x20] sm:$0xff]   ;;  %v443_v18 = vld [vmem:[#allocation11 + $0x10] sm:$0xff]   ;;  %v434_v20 = vld [vmem:[#allocation9 + $0x18] sm:$0xff]   ;;  %s508_s26 = scalar_lea.vmem %s330_s25, 128  ;;  %p513_p7 = scmp.lt.s32.totalorder %s330_s25, %s330_s25 }
  0x33   :  { %384 = vmatprep.subr.bf16.mxu0 %v539_v0  ;;  %v80_v8 = vmul.u32 128, %v75_v4  ;;  %404 = vmatprep.subr.bf16.mxu1 %v539_v0  ;;  %v444_v21 = vld [vmem:[#allocation11 + $0x8] sm:$0xff]   ;;  %v435_v24 = vld [vmem:[#allocation9 + $0x10] sm:$0xff]   ;;  %v437_v30 = vld [vmem:[#allocation9] sm:$0xff]   ;;  %p509_p6 = scmp.ne.s32.totalorder %s330_s25, %s508_s26  ;;  %p514_p8 = scmp.lt.s32.totalorder %s508_s26, %s508_s26 }
  0x34   :  { %v436_v27 = vld [vmem:[#allocation9 + $0x8] sm:$0xff]   ;;  %v72_v31 = vld [vmem:[#allocation6] sm:$0xff]  ;;  %v445_v35 = vld [vmem:[#allocation11] sm:$0xff]  }
  0x35   :  { %v81_v11 = vadd.s32 %v80_v8, %v79_v7  ;;  %v96_v33 = vmul.f32 1.1111112, %v72_v31  ;;  %v343_v36 = vld [vmem:[%s614_s4] ss:$0 sm:$0xff]  ;;  %p515_p9 = por %p514_p8, %p513_p7 }
  0x36   :  { %405 = vmatpush3.bf16.msra.mxu1 %v439_v6 }
  0x37   :  { %406 = vmatprep.subr.bf16.mxu1 %v539_v0  ;;  %v85_v14 = vxor.u32 %v84_v12, %v81_v11  ;;  %v353_v34 = vpack.c.bf16 %v96_v33, %v96_v33  ;;  %p516_p10 = pnand %p515_p9, %p509_p6 }
  0x39   :  { %v86_v17 = vshrl.u32 %v85_v14, 16 }
  0x3a   :  { %385 = vmatpush3.bf16.xpose.msra.mxu0 %v431_v3  ;;  %407 = vmatpush3.bf16.msra.mxu1 %v440_v10 }
  0x3b   :  { %386 = vmatprep.subr.bf16.mxu0 %v539_v0  ;;  %408 = vmatprep.subr.bf16.mxu1 %v539_v0  ;;  %v87_v19 = vxor.u32 %v86_v17, %v85_v14 }
  0x3d   :  { %v88_v22 = vmul.u32 2146121005, %v87_v19 }
  0x3e   :  { %409 = vmatpush3.bf16.msra.mxu1 %v441_v13 }
  0x3f   :  { %410 = vmatprep.subr.bf16.mxu1 %v539_v0  ;;  %v89_v23 = vshrl.u32 %v88_v22, 15 }
  0x41   :  { %v90_v25 = vxor.u32 %v89_v23, %v88_v22 }
  0x42   :  { %387 = vmatpush3.bf16.xpose.msra.mxu0 %v432_v9  ;;  %411 = vmatpush3.bf16.msra.mxu1 %v442_v16 }
  0x43   :  { %388 = vmatprep.subr.bf16.mxu0 %v539_v0  ;;  %412 = vmatprep.subr.bf16.mxu1 %v539_v0  ;;  %v91_v26 = vmul.u32 2221713035, %v90_v25 }
  0x45   :  { %v92_v28 = vshrl.u32 %v91_v26, 16 }
  0x46   :  { %413 = vmatpush3.bf16.msra.mxu1 %v443_v18 }
  0x47   :  { %414 = vmatprep.subr.bf16.mxu1 %v539_v0  ;;  %v93_v29 = vxor.u32 %v92_v28, %v91_v26 }
  0x49   :  { %v94_v32 = vshrl.u32 %v93_v29, 9 }
  0x4a   :  { %389 = vmatpush3.bf16.xpose.msra.mxu0 %v433_v15  ;;  %415 = vmatpush3.bf16.msra.mxu1 %v444_v21 }
  0x4b   :  { %390 = vmatprep.subr.bf16.mxu0 %v539_v0  ;;  %416 = vmatprep.subr.bf16.mxu1 %v539_v0  ;;  %vm95_vm1 = vcmp.ge.u32.totalorder %v94_v32, 838861 }
  0x4c   :  { %vm352_vm2 = vmpackc.low %vm95_vm1, %vm95_vm1 }
  0x4e   :  { %417 = vmatpush3.bf16.msra.mxu1 %v445_v35 }
  0x52   :  { %391 = vmatpush3.bf16.xpose.msra.mxu0 %v434_v20 }
  0x53   :  { %392 = vmatprep.subr.bf16.mxu0 %v539_v0 }
  0x5a   :  { %393 = vmatpush3.bf16.xpose.msra.mxu0 %v435_v24 }
  0x5b   :  { %394 = vmatprep.subr.bf16.mxu0 %v539_v0 }
  0x62   :  { %395 = vmatpush3.bf16.xpose.msra.mxu0 %v436_v27 }
  0x63   :  { %396 = vmatprep.subr.bf16.mxu0 %v539_v0 }
  0x6a   :  { %397 = vmatpush3.bf16.xpose.msra.mxu0 %v437_v30 }
  0x71   :  { %399 = vmatmul.mubr.msk.bf16.vlgmr.msra.gmra.mxu0 %vm352_vm2, %v353_v34 }
 0x131   :  { %v204_v37 = vpop.f32.mrf.mxu0 }
 0x132   :  { %v205_v38 = vadd.f32 %v343_v36, %v204_v37 }
 0x133   :  { %v400_v39 = vpop.f32.mrf.mxu0 }
 0x134   :  { %v211_v40 = vpack.c.bf16 %v205_v38, %v205_v38 }
 0x135   :  { %v207_v41 = vpop.f32.mrf.mxu0 }
 0x136   :  { %419 = vmatmul.mubr.bf16.vlgmr.msra.gmra.mxu1 %v211_v40 }
 0x137   :  { %v401_v42 = vpop.f32.mrf.mxu0 }
 0x1f6   :  { %v310_v43 = vpop.f32.mrf.mxu1 }
 0x1f7   :  { %322 = vst [vmem:[#allocation12] sm:$0xff] %v310_v43 }
 0x1f8   :  { %v420_v44 = vpop.f32.mrf.mxu1 }
 0x1f9   :  { %519 = shalt.err (!%p516_p10)
}
 0x1fa   :  { %332 = dma.vmem_to_hbm [thread:$0]  %s330_s25, 128, %s616_s6, [#allocation8]   ;;  %v313_v45 = vpop.f32.mrf.mxu1 }
 0x1fc   :  { %v421_v46 = vpop.f32.mrf.mxu1 }
 0x1fd   :  { %532 = dma.done.wait [#allocation8], 128  }
 0x1fe   :  { %533 = vsyncadd [#allocation8], 4294967168 }
 0x1ff   :  { %336 = vsyncpa [#allocation7], 1 }
 0x200   :  { %337 = vsyncpa [#allocation10], 1 }
 0x201   :  { %338 = vsyncpa [#allocation8], 1 }

</bundles_post_ra>
